<compile_context>
chip_gen: v6e
topology: v6e:2x2x1
jax: 0.10.0
libtpu: 0.0.40
codegen_flags: <defaults>
</compile_context>

<pallas_src>
import jax
import jax.numpy as jnp
from jax.experimental import pallas as pl
from jax.experimental.pallas import tpu as pltpu


def _round_up(n, m):
    return ((n + m - 1) // m) * m


def _tensorcores_per_chip():
    """Best-effort detection: v7x exposes 2 TensorCores per chip, v5e/v6e one."""
    try:
        kind = jax.devices()[0].device_kind.lower()
        return 2 if ("v7" in kind or "7x" in kind) else 1
    except Exception:  # never let detection break the forward pass
        return 1


def policy_mlp_kernel(x_ref, w1_ref, b1_ref, w2_ref, b2_ref, w3_ref, b3_ref, out_ref):
    """Fused MLP + softmax for one batch tile.

    x_ref  : [tile_b, state]   f32   (native PyTorch input layout; cast in-kernel)
    wN_ref : [out, in]         bf16  (PyTorch nn.Linear layout, VMEM-resident)
    bN_ref : [out, 1]          f32
    out    : [tile_b, action]  f32   (softmax over the action axis)
    """
    x = x_ref[...].astype(jnp.bfloat16)          # bf16 cast lives in-kernel

    # fc1 + relu: contract over state on both operands; the MXU absorbs the
    # transpose and the result lands batch-on-lanes: [hidden, tile_b].
    h1 = jax.lax.dot_general(
        w1_ref[...], x, (((1,), (1,)), ((), ())),
        preferred_element_type=jnp.float32) + b1_ref[...]
    h1 = jnp.maximum(h1, 0.0)

    # fc2 + relu
    h2 = jnp.dot(w2_ref[...], h1.astype(jnp.bfloat16),
                 preferred_element_type=jnp.float32) + b2_ref[...]
    h2 = jnp.maximum(h2, 0.0)

    # fc3
    logits = jnp.dot(w3_ref[...], h2.astype(jnp.bfloat16),
                     preferred_element_type=jnp.float32) + b3_ref[...]

    # numerically-stable softmax over actions (axis 0 in this layout), f32 math
    m = jnp.max(logits, axis=0, keepdims=True)
    e = jnp.exp(logits - m)
    denom = jnp.sum(e, axis=0, keepdims=True)
    inv = pl.reciprocal(denom, approx=True)      # EUP slot; ~2^-12 rel error
    probs = e * inv                              # [action, tile_b]

    # tiny in-kernel transpose -> caller gets [batch, action] with no extra XLA op
    out_ref[...] = probs.T.astype(out_ref.dtype)


def policy_network_forward(x, params, *, max_tile_b=512, num_tensorcores=None):
    """x: [B, state_size] f32.  params: wN [out, in] bf16, bN [out, 1] f32.

    Returns softmax(fc3(relu(fc2(relu(fc1(x)))))) as [B, action_size] f32.
    """
    B, state_size = x.shape
    hidden_size = params["w1"].shape[0]
    action_size = params["w3"].shape[0]

    if num_tensorcores is None:
        num_tensorcores = _tensorcores_per_chip()

    # ---- tiling: fewest grid steps, no extra all-padding tiles ----
    padded_b = _round_up(B, 8)                   # sublane alignment only
    if padded_b <= max_tile_b:
        num_tiles, tile_b = 1, padded_b
        # v7x: give both TensorCores a tile once there is enough batch
        if num_tensorcores >= 2 and padded_b >= 256:
            num_tiles = num_tensorcores
            tile_b = _round_up(pl.cdiv(padded_b, num_tiles), 128)
            padded_b = tile_b * num_tiles
    else:
        num_tiles = pl.cdiv(padded_b, max_tile_b)
        tile_b = _round_up(pl.cdiv(padded_b, num_tiles), 128)
        padded_b = tile_b * num_tiles

    # pad rows only when needed (no-op — and no XLA op — for aligned batches)
    if padded_b != B:
        x_in = jnp.zeros((padded_b, state_size), x.dtype).at[:B, :].set(x)
    else:
        x_in = x

    w1, b1 = params["w1"], params["b1"]
    w2, b2 = params["w2"], params["b2"]
    w3, b3 = params["w3"], params["b3"]

    def resident(shape):  # VMEM-resident across all batch tiles
        return pl.BlockSpec(shape, lambda i: (0, 0))

    flops = 2 * padded_b * (state_size * hidden_size
                            + hidden_size * hidden_size
                            + hidden_size * action_size)
    bytes_accessed = (x_in.size * 4 + padded_b * action_size * 4
                      + sum(int(p.size) * p.dtype.itemsize
                            for p in (w1, b1, w2, b2, w3, b3)))

    out = pl.pallas_call(
        policy_mlp_kernel,
        out_shape=jax.ShapeDtypeStruct((padded_b, action_size), jnp.float32),
        grid=(num_tiles,),
        in_specs=[
            pl.BlockSpec((tile_b, state_size), lambda i: (i, 0)),   # x tile
            resident((hidden_size, state_size)),                    # w1
            resident((hidden_size, 1)),                             # b1
            resident((hidden_size, hidden_size)),                   # w2
            resident((hidden_size, 1)),                             # b2
            resident((action_size, hidden_size)),                   # w3
            resident((action_size, 1)),                             # b3
        ],
        out_specs=pl.BlockSpec((tile_b, action_size), lambda i: (i, 0)),
        compiler_params=pltpu.CompilerParams(
            dimension_semantics=("parallel",) if num_tiles > 1 else ("arbitrary",)),
        cost_estimate=pl.CostEstimate(
            flops=flops,
            transcendentals=padded_b * (action_size + 1),
            bytes_accessed=bytes_accessed),
    )(x_in, w1, b1, w2, b2, w3, b3)

    return out if padded_b == B else out[:B]


def init_params(key, state_size, action_size, hidden_size=64):
    """nn.Linear-style init U(-1/sqrt(fan_in), 1/sqrt(fan_in)); PyTorch [out, in] layout."""
    ks = jax.random.split(key, 6)

    def linear(kw, kb, fan_in, fan_out):
        bound = 1.0 / jnp.sqrt(jnp.float32(fan_in))
        w = jax.random.uniform(kw, (fan_out, fan_in), jnp.float32, -bound, bound)
        b = jax.random.uniform(kb, (fan_out, 1), jnp.float32, -bound, bound)
        return w.astype(jnp.bfloat16), b   # weights bf16 (MXU-native), biases f32

    w1, b1 = linear(ks[0], ks[1], state_size, hidden_size)
    w2, b2 = linear(ks[2], ks[3], hidden_size, hidden_size)
    w3, b3 = linear(ks[4], ks[5], hidden_size, action_size)
    return {"w1": w1, "b1": b1, "w2": w2, "b2": b2, "w3": w3, "b3": b3}


def reference_forward(x, params):
    """Pure-JAX reference with matching precision (bf16 matmul inputs, f32 accum)."""
    def lin(h, w, b):
        return jnp.dot(h.astype(jnp.bfloat16), w.T,
                       preferred_element_type=jnp.float32) + b.T
    h1 = jnp.maximum(lin(x, params["w1"], params["b1"]), 0.0)
    h2 = jnp.maximum(lin(h1, params["w2"], params["b2"]), 0.0)
    return jax.nn.softmax(lin(h2, params["w3"], params["b3"]), axis=-1)


if __name__ == "__main__":
    key = jax.random.PRNGKey(0)
    k_x, k_p = jax.random.split(key)

    batch, state_size, hidden_size, action_size = 8, 16, 64, 8
    x = jax.random.normal(k_x, (batch, state_size), jnp.float32)
    params = init_params(k_p, state_size, action_size, hidden_size)

    out = jax.block_until_ready(policy_network_forward(x, params))
    ref = reference_forward(x, params)

    assert out.shape == (batch, action_size)
    # tolerance covers approx-reciprocal (~2^-12 rel) on top of bf16-weight matmuls
    assert jnp.allclose(out, ref, atol=2e-3, rtol=2e-3), \
        float(jnp.max(jnp.abs(out - ref)))
    assert jnp.allclose(jnp.sum(out, axis=-1), jnp.ones((batch,)), atol=2e-3)

    print("KERNEL_OK")
</pallas_src>

<mosaic_0001>
module attributes {stable_mosaic.version = 11 : i64} {
  func.func @policy_mlp_kernel(%arg0: i32, %arg1: memref<8x16xf32, #tpu.memory_space<vmem>>, %arg2: memref<64x16xbf16, #tpu.memory_space<vmem>>, %arg3: memref<64x1xf32, #tpu.memory_space<vmem>>, %arg4: memref<64x64xbf16, #tpu.memory_space<vmem>>, %arg5: memref<64x1xf32, #tpu.memory_space<vmem>>, %arg6: memref<8x64xbf16, #tpu.memory_space<vmem>>, %arg7: memref<8x1xf32, #tpu.memory_space<vmem>>, %arg8: memref<8x8xf32, #tpu.memory_space<vmem>>) attributes {dimension_semantics = [#tpu.dimension_semantics<arbitrary>], iteration_bounds = array<i64: 1>, scalar_prefetch = 0 : i64, scratch_operands = 0 : i64, tpu.core_type = #tpu.core_type<tc>, window_params = [{transform_indices = @transform_0, window_bounds = array<i64: 8, 16>}, {pipeline_mode = #tpu.pipeline_mode<synchronous>, transform_indices = @transform_1, window_bounds = array<i64: 64, 16>}, {pipeline_mode = #tpu.pipeline_mode<synchronous>, transform_indices = @transform_2, window_bounds = array<i64: 64, 1>}, {pipeline_mode = #tpu.pipeline_mode<synchronous>, transform_indices = @transform_3, window_bounds = array<i64: 64, 64>}, {pipeline_mode = #tpu.pipeline_mode<synchronous>, transform_indices = @transform_4, window_bounds = array<i64: 64, 1>}, {pipeline_mode = #tpu.pipeline_mode<synchronous>, transform_indices = @transform_5, window_bounds = array<i64: 8, 64>}, {pipeline_mode = #tpu.pipeline_mode<synchronous>, transform_indices = @transform_6, window_bounds = array<i64: 8, 1>}, {transform_indices = @transform_7, window_bounds = array<i64: 8, 8>}]} {
    %c0 = arith.constant 0 : index
    %c0_0 = arith.constant 0 : index
    %0 = vector.load %arg1[%c0, %c0_0] : memref<8x16xf32, #tpu.memory_space<vmem>>, vector<8x16xf32>
    %1 = arith.truncf %0 : vector<8x16xf32> to vector<8x16xbf16>
    %c0_1 = arith.constant 0 : index
    %c0_2 = arith.constant 0 : index
    %2 = vector.load %arg2[%c0_1, %c0_2] : memref<64x16xbf16, #tpu.memory_space<vmem>>, vector<64x16xbf16>
    %cst = arith.constant dense<0.000000e+00> : vector<64x8xf32>
    %3 = tpu.matmul %2, %1, %cst {dimension_numbers = #tpu.dot_dimension_numbers<[1], [1], [0], [0], [0, 0, 1, 0], [], []>} : vector<64x16xbf16>, vector<8x16xbf16>, vector<64x8xf32> -> vector<64x8xf32>
    %c0_3 = arith.constant 0 : index
    %c0_4 = arith.constant 0 : index
    %4 = vector.load %arg3[%c0_3, %c0_4] : memref<64x1xf32, #tpu.memory_space<vmem>>, vector<64x1xf32>
    %5 = vector.broadcast %4 : vector<64x1xf32> to vector<64x8xf32>
    %6 = arith.addf %3, %5 : vector<64x8xf32>
    %cst_5 = arith.constant 0.000000e+00 : f32
    %7 = vector.broadcast %cst_5 : f32 to vector<64x8xf32>
    %8 = arith.maximumf %6, %7 : vector<64x8xf32>
    %c0_6 = arith.constant 0 : index
    %c0_7 = arith.constant 0 : index
    %9 = vector.load %arg4[%c0_6, %c0_7] : memref<64x64xbf16, #tpu.memory_space<vmem>>, vector<64x64xbf16>
    %10 = arith.truncf %8 : vector<64x8xf32> to vector<64x8xbf16>
    %cst_8 = arith.constant dense<0.000000e+00> : vector<64x8xf32>
    %11 = tpu.matmul %9, %10, %cst_8 {dimension_numbers = #tpu.dot_dimension_numbers<[1], [0], [0], [1], [0, 0, 1, 1], [], []>} : vector<64x64xbf16>, vector<64x8xbf16>, vector<64x8xf32> -> vector<64x8xf32>
    %c0_9 = arith.constant 0 : index
    %c0_10 = arith.constant 0 : index
    %12 = vector.load %arg5[%c0_9, %c0_10] : memref<64x1xf32, #tpu.memory_space<vmem>>, vector<64x1xf32>
    %13 = vector.broadcast %12 : vector<64x1xf32> to vector<64x8xf32>
    %14 = arith.addf %11, %13 : vector<64x8xf32>
    %cst_11 = arith.constant 0.000000e+00 : f32
    %15 = vector.broadcast %cst_11 : f32 to vector<64x8xf32>
    %16 = arith.maximumf %14, %15 : vector<64x8xf32>
    %c0_12 = arith.constant 0 : index
    %c0_13 = arith.constant 0 : index
    %17 = vector.load %arg6[%c0_12, %c0_13] : memref<8x64xbf16, #tpu.memory_space<vmem>>, vector<8x64xbf16>
    %18 = arith.truncf %16 : vector<64x8xf32> to vector<64x8xbf16>
    %cst_14 = arith.constant dense<0.000000e+00> : vector<8x8xf32>
    %19 = tpu.matmul %17, %18, %cst_14 {dimension_numbers = #tpu.dot_dimension_numbers<[1], [0], [0], [1], [0, 0, 1, 1], [], []>} : vector<8x64xbf16>, vector<64x8xbf16>, vector<8x8xf32> -> vector<8x8xf32>
    %c0_15 = arith.constant 0 : index
    %c0_16 = arith.constant 0 : index
    %20 = vector.load %arg7[%c0_15, %c0_16] : memref<8x1xf32, #tpu.memory_space<vmem>>, vector<8x1xf32>
    %21 = vector.broadcast %20 : vector<8x1xf32> to vector<8x8xf32>
    %22 = arith.addf %19, %21 : vector<8x8xf32>
    %cst_17 = arith.constant dense<0xFF800000> : vector<8xf32>
    %23 = vector.multi_reduction <maximumf>, %22, %cst_17 [0] : vector<8x8xf32> to vector<8xf32>
    %24 = vector.shape_cast %23 : vector<8xf32> to vector<1x8xf32>
    %25 = vector.broadcast %24 : vector<1x8xf32> to vector<8x8xf32>
    %26 = arith.subf %22, %25 : vector<8x8xf32>
    %27 = math.exp %26 : vector<8x8xf32>
    %cst_18 = arith.constant dense<0.000000e+00> : vector<8xf32>
    %28 = vector.multi_reduction <add>, %27, %cst_18 [0] : vector<8x8xf32> to vector<8xf32>
    %29 = vector.shape_cast %28 : vector<8xf32> to vector<1x8xf32>
    %30 = tpu.reciprocal %29 {approx = true} : vector<1x8xf32> -> vector<1x8xf32>
    %31 = vector.broadcast %30 : vector<1x8xf32> to vector<8x8xf32>
    %32 = arith.mulf %27, %31 : vector<8x8xf32>
    %33 = tpu.transpose %32, [1, 0] : vector<8x8xf32> -> vector<8x8xf32>
    %c0_19 = arith.constant 0 : index
    %c0_20 = arith.constant 0 : index
    %34 = vector.load %arg8[%c0_19, %c0_20] : memref<8x8xf32, #tpu.memory_space<vmem>>, vector<8x8xf32>
    tpu.vector_store %arg8[%c0_19, %c0_20], %33 {strides = array<i32>} : memref<8x8xf32, #tpu.memory_space<vmem>>, vector<8x8xf32>,
    return
  }
  func.func @transform_0(%arg0: i32) -> (i32, i32) {
    %c0_i32 = arith.constant 0 : i32
    %c0_i32_0 = arith.constant 0 : i32
    return %arg0, %c0_i32 : i32, i32
  }
  func.func @transform_1(%arg0: i32) -> (i32, i32) {
    %c0_i32 = arith.constant 0 : i32
    %c0_i32_0 = arith.constant 0 : i32
    %c0_i32_1 = arith.constant 0 : i32
    return %c0_i32, %c0_i32_0 : i32, i32
  }
  func.func @transform_2(%arg0: i32) -> (i32, i32) {
    %c0_i32 = arith.constant 0 : i32
    %c0_i32_0 = arith.constant 0 : i32
    %c0_i32_1 = arith.constant 0 : i32
    return %c0_i32, %c0_i32_0 : i32, i32
  }
  func.func @transform_3(%arg0: i32) -> (i32, i32) {
    %c0_i32 = arith.constant 0 : i32
    %c0_i32_0 = arith.constant 0 : i32
    %c0_i32_1 = arith.constant 0 : i32
    return %c0_i32, %c0_i32_0 : i32, i32
  }
  func.func @transform_4(%arg0: i32) -> (i32, i32) {
    %c0_i32 = arith.constant 0 : i32
    %c0_i32_0 = arith.constant 0 : i32
    %c0_i32_1 = arith.constant 0 : i32
    return %c0_i32, %c0_i32_0 : i32, i32
  }
  func.func @transform_5(%arg0: i32) -> (i32, i32) {
    %c0_i32 = arith.constant 0 : i32
    %c0_i32_0 = arith.constant 0 : i32
    %c0_i32_1 = arith.constant 0 : i32
    return %c0_i32, %c0_i32_0 : i32, i32
  }
  func.func @transform_6(%arg0: i32) -> (i32, i32) {
    %c0_i32 = arith.constant 0 : i32
    %c0_i32_0 = arith.constant 0 : i32
    %c0_i32_1 = arith.constant 0 : i32
    return %c0_i32, %c0_i32_0 : i32, i32
  }
  func.func @transform_7(%arg0: i32) -> (i32, i32) {
    %c0_i32 = arith.constant 0 : i32
    %c0_i32_0 = arith.constant 0 : i32
    return %arg0, %c0_i32 : i32, i32
  }
}

</mosaic_0001>

<bundles_post_ra>
// kernel: tpu_custom_call.1
= control target key start
LH: loop header
LB: loop body
LE: loop exit
PB: predicated region body
PF: predicated region fallthrough
CT: control target
= control target key end

     0   :  { %vm106_vm0 = vcmask 130048   ;;  %v596_v3 = vmov 0   ;;  %s738_s0 = inlined_call_operand.vmem [shape: f32[8,16], index: 0, kind: input, shape index: {}]   ;;  %s739_s1 = inlined_call_operand.vmem [shape: bf16[64,16], index: 1, kind: input, shape index: {}]   ;;  %s740_s2 = inlined_call_operand.vmem [shape: f32[64,1], index: 2, kind: input, shape index: {}]   ;;  %s741_s3 = inlined_call_operand.vmem [shape: bf16[64,64], index: 3, kind: input, shape index: {}]   ;;  %s742_s4 = inlined_call_operand.vmem [shape: f32[64,1], index: 4, kind: input, shape index: {}]   ;;  %s743_s5 = inlined_call_operand.vmem [shape: bf16[8,64], index: 5, kind: input, shape index: {}]   ;;  %s744_s6 = inlined_call_operand.vmem [shape: f32[8,1], index: 6, kind: input, shape index: {}]   ;;  %s745_s7 = inlined_call_operand.hbm [shape: f32[8,8], index: 7, kind: output, shape index: {}]  }
   0x1   :  { %v28_v0 = vld [vmem:[%s738_s0] sm:$0xff]  ;;  %560 = vset.pattern.permute.xlu0 %v596_v3  ;;  %561 = vset.pattern.permute.xlu1 %v596_v3  ;;  %v44_v5 = vld [vmem:[%s740_s2 + $0x30] sm:$0xff]  ;;  %v45_v7 = vld [vmem:[%s740_s2 + $0x38] sm:$0xff] }
   0x2   :  { %v29_v1 = vpack.c.bf16 %v28_v0, %v28_v0  ;;  %v562_v2 = vld [vmem:[%s739_s1] sm:$0xff]   ;;  %78 = vperm.xlu0 %560, %v44_v5   ;;  %v563_v8 = vld [vmem:[%s739_s1 + $0x8] sm:$0xff]   ;;  %v564_v10 = vld [vmem:[%s739_s1 + $0x10] sm:$0xff]  }
   0x3   :  { %519 = vmatprep.mubr.msk.bf16.mxu0 %vm106_vm0, %v562_v2  ;;  %v42_v6 = vld [vmem:[%s740_s2 + $0x20] sm:$0xff]  ;;  %v43_v9 = vld [vmem:[%s740_s2 + $0x28] sm:$0xff]  ;;  %v40_v11 = vld [vmem:[%s740_s2 + $0x10] sm:$0xff] }
   0x4   :  { %555 = vmatprep.subr.msk.bf16.mxu0 %vm106_vm0, %v29_v1  ;;  %v120_v4 = vsel %vm106_vm0, %v29_v1, 0  ;;  %68 = vperm.xlu1 %561, %v42_v6   ;;  %v41_v12 = vld [vmem:[%s740_s2 + $0x18] sm:$0xff] }
   0x5   :  { %518 = vmatpush3.bf16.xpose.msra.mxu0 %v120_v4 }
   0x6   :  { %83 = vperm.xlu0 %560, %v45_v7  }
   0x8   :  { %73 = vperm.xlu1 %561, %v43_v9  }
   0xc   :  { %520 = vmatmul.mubr.msk.bf16.vlgmr.msra.gmra.mxu0 %vm106_vm0, %v563_v8 }
   0xd   :  { %523 = vmatprep.mubr.msk.bf16.mxu0 %vm106_vm0, %v564_v10 }
   0xe   :  { %12 = vsyncpa [#allocation3], 0  ;;  %58 = vperm.xlu0 %560, %v40_v11   ;;  %v38_v13 = vld [vmem:[%s740_s2] sm:$0xff]  ;;  %63 = vperm.xlu1 %561, %v41_v12   ;;  %v565_v14 = vld [vmem:[%s739_s1 + $0x18] sm:$0xff]   ;;  %vm275_vm1 = vcmask 523264   ;;  %v597_v1 = vmov 0.0  }
   0xf   :  { %v39_v15 = vld [vmem:[%s740_s2 + $0x8] sm:$0xff]  ;;  %v213_v16 = vld [vmem:[%s742_s4 + $0x30] sm:$0xff]  ;;  %v214_v17 = vld [vmem:[%s742_s4 + $0x38] sm:$0xff]  ;;  %543 = vmatprep.subr.bf16.mxu0 %v597_v1  ;;  %vm598_vm2 = vmmov 0   ;;  %vm415_vm3 = vcmask 64512  }
  0x10   :  { %v211_v18 = vld [vmem:[%s742_s4 + $0x20] sm:$0xff]  ;;  %v212_v19 = vld [vmem:[%s742_s4 + $0x28] sm:$0xff]  ;;  %v209_v20 = vld [vmem:[%s742_s4 + $0x10] sm:$0xff] }
  0x11   :  { %v210_v21 = vld [vmem:[%s742_s4 + $0x18] sm:$0xff]  ;;  %v207_v22 = vld [vmem:[%s742_s4] sm:$0xff]  ;;  %v208_v23 = vld [vmem:[%s742_s4 + $0x8] sm:$0xff] }
  0x12   :  { %48 = vperm.xlu0 %560, %v38_v13   ;;  %53 = vperm.xlu1 %561, %v39_v15   ;;  %v366_v24 = vld [vmem:[%s744_s6] sm:$0xff]  ;;  %v567_v62 = vld [vmem:[%s741_s3 + $0x8] sm:$0xff]   ;;  %v568_v63 = vld [vmem:[%s741_s3 + $0x10] sm:$0xff]  }
  0x13   :  { %v566_v25 = vld [vmem:[%s741_s3] sm:$0xff]   ;;  %v569_v0 = vld [vmem:[%s741_s3 + $0x18] sm:$0xff]  }
  0x14   :  { %524 = vmatmul.mubr.msk.bf16.gmra.mxu0 %vm106_vm0, %v565_v14  ;;  %535 = vmatprep.mubr.msk.bf16.mxu1 %vm275_vm1, %v566_v25 }
  0x15   :  { %551 = vmatprep.mubr.msk.bf16.mxu0 %vm598_vm2, %v597_v1 }
  0x16   :  { %247 = vperm.xlu0 %560, %v213_v16   ;;  %252 = vperm.xlu1 %561, %v214_v17  }
  0x1a   :  { %237 = vperm.xlu0 %560, %v211_v18   ;;  %242 = vperm.xlu1 %561, %v212_v19  }
  0x1e   :  { %227 = vperm.xlu0 %560, %v209_v20   ;;  %232 = vperm.xlu1 %561, %v210_v21  }
  0x22   :  { %217 = vperm.xlu0 %560, %v207_v22   ;;  %222 = vperm.xlu1 %561, %v208_v23  }
  0x26   :  { %369 = vperm.xlu0 %560, %v366_v24  }
  0x7d   :  { %v79_v28 = vpop.permute.xlu0 %78 }
  0x7f   :  { %v69_v26 = vpop.permute.xlu1 %68 }
  0x81   :  { %v84_v33 = vpop.permute.xlu0 %83 }
  0x83   :  { %v74_v31 = vpop.permute.xlu1 %73 }
  0x89   :  { %v64_v37 = vpop.permute.xlu1 %63  ;;  %v59_v41 = vpop.permute.xlu0 %58 }
  0x8d   :  { %v54_v51 = vpop.permute.xlu1 %53  ;;  %v49_v55 = vpop.permute.xlu0 %48 }
  0x91   :  { %v253_v3 = vpop.permute.xlu1 %252  ;;  %v248_v5 = vpop.permute.xlu0 %247 }
  0x95   :  { %v243_v8 = vpop.permute.xlu1 %242  ;;  %v238_v10 = vpop.permute.xlu0 %237 }
  0x99   :  { %v233_v15 = vpop.permute.xlu1 %232  ;;  %v228_v21 = vpop.permute.xlu0 %227 }
  0xcc   :  { %v521_v27 = vpop.f32.mrf.mxu0 }
  0xcd   :  { %v165_v47 = vadd.f32 %v521_v27, %v59_v41  ;;  %v223_v27 = vpop.permute.xlu1 %222 }
  0xce   :  { %v156_v29 = vpop.f32.mrf.mxu0 }
  0xcf   :  { %v189_v56 = vmax.f32 %v165_v47, 0.0  ;;  %v157_v57 = vadd.f32 %v156_v29, %v49_v55 }
  0xd0   :  { %v522_v30 = vpop.f32.mrf.mxu0 }
  0xd1   :  { %v168_v43 = vadd.f32 %v522_v30, %v64_v37  ;;  %v187_v60 = vmax.f32 %v157_v57, 0.0 }
  0xd2   :  { %v159_v32 = vpop.f32.mrf.mxu0 }
  0xd3   :  { %v190_v52 = vmax.f32 %v168_v43, 0.0  ;;  %v160_v53 = vadd.f32 %v159_v32, %v54_v51 }
  0xd4   :  { %v525_v34 = vpop.f32.mrf.mxu0 }
  0xd5   :  { %v181_v36 = vadd.f32 %v525_v34, %v79_v28  ;;  %v204_v58 = vpack.c.bf16 %v190_v52, %v189_v56  ;;  %v188_v59 = vmax.f32 %v160_v53, 0.0 }
  0xd6   :  { %v172_v35 = vpop.f32.mrf.mxu0 }
  0xd7   :  { %v173_v39 = vadd.f32 %v172_v35, %v69_v26  ;;  %v193_v44 = vmax.f32 %v181_v36, 0.0  ;;  %v203_v61 = vpack.c.bf16 %v188_v59, %v187_v60 }
  0xd8   :  { %v526_v38 = vpop.f32.mrf.mxu0 }
  0xd9   :  { %v184_v40 = vadd.f32 %v526_v38, %v84_v33  ;;  %v191_v48 = vmax.f32 %v173_v39, 0.0  ;;  %v361_v38 = vld [vmem:[%s743_s5] sm:$0xf]  ;;  %s599_s5 = smov [#allocation2]  }
  0xda   :  { %v175_v42 = vpop.f32.mrf.mxu0  ;;  %s474_s25 = sshll.u32 %s599_s5, 4  ;;  %s475_s25 = int_to_ptr.vmem [resolvable:$true] %s474_s25 }
  0xdb   :  { %v194_v45 = vmax.f32 %v184_v40, 0.0  ;;  %v176_v46 = vadd.f32 %v175_v42, %v74_v31  ;;  %v218_v31 = vpop.permute.xlu0 %217  ;;  %s574_s26 = scalar_lea.vmem %s475_s25, 128  ;;  %p579_p1 = scmp.lt.s32.totalorder %s475_s25, %s475_s25 }
  0xdc   :  { %p575_p0 = scmp.ne.s32.totalorder %s475_s25, %s574_s26  ;;  %p580_p2 = scmp.lt.s32.totalorder %s574_s26, %s574_s26 }
  0xdd   :  { %v192_v49 = vmax.f32 %v176_v46, 0.0  ;;  %v206_v50 = vpack.c.bf16 %v194_v45, %v193_v44 }
  0xde   :  { %p581_p3 = por %p580_p2, %p579_p1 }
  0xdf   :  { %v205_v54 = vpack.c.bf16 %v192_v49, %v191_v48  ;;  %527 = vmatprep.subr.bf16.mxu1 %v206_v50  ;;  %v370_v39 = vpop.permute.xlu0 %369 }
  0xe0   :  { %528 = vmatpush3.bf16.msra.mxu1 %v206_v50  ;;  %p582_p4 = pnand %p581_p3, %p575_p0 }
  0xe1   :  { %529 = vmatprep.subr.bf16.mxu1 %v205_v54 }
  0xe4   :  { %530 = vmatpush3.bf16.msra.mxu1 %v205_v54 }
  0xe5   :  { %531 = vmatprep.subr.bf16.mxu1 %v204_v58 }
  0xe8   :  { %532 = vmatpush3.bf16.msra.mxu1 %v204_v58 }
  0xe9   :  { %533 = vmatprep.subr.bf16.mxu1 %v203_v61 }
  0xec   :  { %534 = vmatpush3.bf16.msra.mxu1 %v203_v61 }
  0xef   :  { %536 = vmatmul.mubr.msk.bf16.vlgmr.msra.gmra.mxu1 %vm275_vm1, %v567_v62 }
  0xf0   :  { %539 = vmatprep.mubr.msk.bf16.mxu1 %vm275_vm1, %v568_v63 }
  0xf7   :  { %540 = vmatmul.mubr.msk.bf16.gmra.mxu1 %vm275_vm1, %v569_v0 }
 0x1af   :  { %v537_v2 = vpop.f32.mrf.mxu1 }
 0x1b0   :  { %v331_v25 = vadd.f32 %v537_v2, %v228_v21 }
 0x1b1   :  { %v322_v4 = vpop.f32.mrf.mxu1 }
 0x1b2   :  { %v355_v32 = vmax.f32 %v331_v25, 0.0  ;;  %v323_v33 = vadd.f32 %v322_v4, %v218_v31 }
 0x1b3   :  { %v538_v6 = vpop.f32.mrf.mxu1 }
 0x1b4   :  { %v334_v22 = vadd.f32 %v538_v6, %v233_v15  ;;  %v353_v36 = vmax.f32 %v323_v33, 0.0 }
 0x1b5   :  { %v325_v7 = vpop.f32.mrf.mxu1 }
 0x1b6   :  { %v356_v28 = vmax.f32 %v334_v22, 0.0  ;;  %v326_v29 = vadd.f32 %v325_v7, %v223_v27 }
 0x1b7   :  { %v541_v9 = vpop.f32.mrf.mxu1 }
 0x1b8   :  { %v347_v12 = vadd.f32 %v541_v9, %v248_v5  ;;  %v363_v34 = vpack.c.bf16 %v356_v28, %v355_v32  ;;  %v354_v35 = vmax.f32 %v326_v29, 0.0 }
 0x1b9   :  { %v338_v11 = vpop.f32.mrf.mxu1 }
 0x1ba   :  { %v359_v17 = vmax.f32 %v347_v12, 0.0  ;;  %v339_v18 = vadd.f32 %v338_v11, %v238_v10  ;;  %v362_v37 = vpack.c.bf16 %v354_v35, %v353_v36 }
 0x1bb   :  { %v542_v13 = vpop.f32.mrf.mxu1 }
 0x1bc   :  { %v350_v14 = vadd.f32 %v542_v13, %v253_v3  ;;  %v357_v26 = vmax.f32 %v339_v18, 0.0 }
 0x1bd   :  { %v341_v16 = vpop.f32.mrf.mxu1 }
 0x1be   :  { %v360_v19 = vmax.f32 %v350_v14, 0.0  ;;  %v342_v20 = vadd.f32 %v341_v16, %v243_v8 }
 0x1c0   :  { %v365_v23 = vpack.c.bf16 %v360_v19, %v359_v17  ;;  %v358_v24 = vmax.f32 %v342_v20, 0.0 }
 0x1c2   :  { %544 = vmatpush3.bf16.msra.mxu0 %v365_v23  ;;  %v364_v30 = vpack.c.bf16 %v358_v24, %v357_v26 }
 0x1c3   :  { %545 = vmatprep.subr.bf16.mxu0 %v597_v1 }
 0x1c6   :  { %546 = vmatpush3.bf16.msra.mxu0 %v364_v30 }
 0x1c7   :  { %547 = vmatprep.subr.bf16.mxu0 %v597_v1 }
 0x1ca   :  { %548 = vmatpush3.bf16.msra.mxu0 %v363_v34 }
 0x1cb   :  { %549 = vmatprep.subr.bf16.mxu0 %v597_v1 }
 0x1ce   :  { %550 = vmatpush3.bf16.msra.mxu0 %v362_v37 }
 0x1d1   :  { %552 = vmatmul.mubr.msk.bf16.vlgmr.msra.gmra.mxu0 %vm275_vm1, %v361_v38 }
 0x291   :  { %v409_v40 = vpop.f32.mrf.mxu0 }
 0x292   :  { %v410_v41 = vadd.f32 %v409_v40, %v370_v39 }
 0x293   :  { %v553_v42 = vpop.f32.mrf.mxu0 }
 0x294   :  { %v416_v43 = vsel %vm415_vm3, %v410_v41, -inf }
 0x295   :  { %v417_v44 = vrot.slane %v416_v43, 4  ;;  %v412_v45 = vpop.f32.mrf.mxu0 }
 0x297   :  { %v418_v46 = vmax.f32 %v416_v43, %v417_v44  ;;  %v554_v47 = vpop.f32.mrf.mxu0 }
 0x299   :  { %v419_v48 = vrot.slane %v418_v46, 2 }
 0x29b   :  { %v420_v49 = vmax.f32 %v418_v46, %v419_v48 }
 0x29d   :  { %v421_v50 = vrot.slane %v420_v49, 1 }
 0x29f   :  { %v422_v51 = vmax.f32 %v420_v49, %v421_v50 }
 0x2a1   :  { %v423_v52 = vsub.f32 %v410_v41, %v422_v51 }
 0x2a3   :  { %v424_v53 = vmul.f32 1.442695, %v423_v52 }
 0x2a5   :  { %570 = vpow2.f32 %v424_v53 }
 0x2b2   :  { %v571_v54 = vpop.eup %570 }
 0x2b3   :  { %v426_v55 = vsel %vm415_vm3, %v571_v54, 0.0 }
 0x2b4   :  { %v427_v56 = vrot.slane %v426_v55, 4 }
 0x2b6   :  { %v428_v57 = vadd.f32 %v427_v56, %v426_v55 }
 0x2b8   :  { %v429_v58 = vrot.slane %v428_v57, 2 }
 0x2ba   :  { %v430_v59 = vadd.f32 %v429_v58, %v428_v57 }
 0x2bc   :  { %v431_v60 = vrot.slane %v430_v59, 1 }
 0x2be   :  { %v432_v61 = vadd.f32 %v431_v60, %v430_v59 }
 0x2c0   :  { %572 = vrcp.f32 %v432_v61 }
 0x2cd   :  { %v573_v62 = vpop.eup %572 }
 0x2ce   :  { %v434_v63 = vmul.f32 %v573_v62, %v571_v54 }
 0x2d0   :  { %435 = vxpose.xlu1.b32.start.end [1/1] (short) (narrow) %v434_v63, 8 }
 0x34c   :  { %v451_v0 = vpop.trf.xlu1 }
 0x34d   :  { %467 = vst.msk [vmem:[#allocation2] sm:$0xff] %vm415_vm3, %v451_v0 }
 0x34e   :  { %585 = shalt.err (!%p582_p4)
}
 0x34f   :  { %477 = dma.vmem_to_hbm [thread:$0]  %s475_s25, 128, %s745_s7, [#allocation3]  }
 0x350   :  { %594 = dma.done.wait [#allocation3], 128  }
 0x351   :  { %595 = vsyncadd [#allocation3], 4294967168 }
 0x352   :  { %481 = vsyncpa [#allocation3], 1 }

</bundles_post_ra>
